<compile_context>
chip_gen: v7x
topology: tpu7x:2x2x1
jax: 0.10.0
libtpu: 0.0.40
codegen_flags: <defaults>
</compile_context>

<pallas_src>
import jax
import jax.numpy as jnp
from jax.experimental import pallas as pl
from jax.experimental.pallas import tpu as pltpu

IN_FEATURES = 784
NUM_CLASSES = 10


def net_kernel(x_ref, w_ref, b_ref, o_ref):
    # x: (TB, 784)  w: (784, 10)  b: (1, 10)  o: (TB, 10)
    x = x_ref[...]
    w = w_ref[...]
    b = b_ref[...]
    logits = jnp.dot(x, w, preferred_element_type=jnp.float32) + b
    # numerically-stable softmax over the class axis (dim=1); exact divide so
    # rows sum to 1 to f32 precision.
    m = jnp.max(logits, axis=-1, keepdims=True)
    e = jnp.exp(logits - m)
    denom = jnp.sum(e, axis=-1, keepdims=True)
    o_ref[...] = (e / denom).astype(o_ref.dtype)


def _round_up(n, m):
    return ((n + m - 1) // m) * m


def net_forward(x, w, b, *, tb=None):
    """x: any shape that flattens to (-1, 784); returns (B, 10) f32 softmax probs.

    Pass bf16 activations to halve HBM traffic (weights are matched to the
    activation dtype; accumulation is always f32).
    """
    x2 = x.reshape(-1, IN_FEATURES)          # keep the caller's dtype, no cast here
    B = x2.shape[0]

    if tb is None:
        # 2048 rows f32 / 4096 rows bf16 -> ~6.4 MiB per input buffer.
        tb = 4096 if jnp.dtype(x2.dtype).itemsize <= 2 else 2048
    TB = max(8, min(_round_up(int(tb), 8), _round_up(B, 8)))
    n_tiles = pl.cdiv(B, TB)                 # ragged last tile handled by Pallas

    w2 = w.reshape(IN_FEATURES, NUM_CLASSES)
    if w2.dtype != x2.dtype:
        w2 = w2.astype(x2.dtype)             # matched-dtype MXU pass (bf16 x bf16)
    b2 = b.reshape(1, NUM_CLASSES).astype(jnp.float32)

    x_bytes = B * IN_FEATURES * jnp.dtype(x2.dtype).itemsize
    w_bytes = IN_FEATURES * NUM_CLASSES * jnp.dtype(w2.dtype).itemsize
    cost = pl.CostEstimate(
        flops=2 * B * IN_FEATURES * NUM_CLASSES,
        transcendentals=B * NUM_CLASSES,
        bytes_accessed=x_bytes + w_bytes + NUM_CLASSES * 4 + B * NUM_CLASSES * 4,
    )

    out = pl.pallas_call(
        net_kernel,
        out_shape=jax.ShapeDtypeStruct((B, NUM_CLASSES), jnp.float32),
        grid=(n_tiles,),
        in_specs=[
            # activation stream: tiled over the batch, double-buffered by Pallas
            pl.BlockSpec((TB, IN_FEATURES), lambda i: (i, 0)),
            # weights / bias: constant blocks, DMA'd once and kept VMEM-resident
            pl.BlockSpec((IN_FEATURES, NUM_CLASSES), lambda i: (0, 0)),
            pl.BlockSpec((1, NUM_CLASSES), lambda i: (0, 0)),
        ],
        out_specs=pl.BlockSpec((TB, NUM_CLASSES), lambda i: (i, 0)),
        compiler_params=pltpu.CompilerParams(
            dimension_semantics=("parallel",),   # shards tiles across v7x's 2 TCs
            vmem_limit_bytes=32 * 1024 * 1024,   # headroom for TB=2048 f32 / 4096 bf16
        ),
        cost_estimate=cost,
    )(x2, w2, b2)

    return out


if __name__ == "__main__":
    key = jax.random.PRNGKey(0)
    kx, kw, kb = jax.random.split(key, 3)

    # Deterministic parameter init (shapes from nn.Linear(784, 10)).
    bound = 1.0 / (IN_FEATURES ** 0.5)
    w = jax.random.uniform(kw, (IN_FEATURES, NUM_CLASSES), jnp.float32,
                           minval=-bound, maxval=bound)
    b = jax.random.uniform(kb, (NUM_CLASSES,), jnp.float32,
                           minval=-bound, maxval=bound)

    # Small MNIST-like batch: 4 images of 1x28x28 (flattened to 784 in forward).
    x = jax.random.normal(kx, (4, 1, 28, 28), jnp.float32)

    out = net_forward(x, w, b)
    out = jax.block_until_ready(out)

    # sanity: shape, rows sum to 1, matches pure-JAX reference
    assert out.shape == (4, NUM_CLASSES)
    assert jnp.allclose(jnp.sum(out, axis=1), 1.0, atol=1e-3)
    ref = jax.nn.softmax(x.reshape(-1, IN_FEATURES) @ w + b, axis=1)
    assert jnp.allclose(out, ref, atol=2e-3)
    print("KERNEL_OK")
</pallas_src>

<mosaic_0001>
module attributes {stable_mosaic.version = 11 : i64} {
  func.func @net_kernel(%arg0: i32, %arg1: memref<8x784xf32, #tpu.memory_space<vmem>>, %arg2: memref<784x10xf32, #tpu.memory_space<vmem>>, %arg3: memref<1x10xf32, #tpu.memory_space<vmem>>, %arg4: memref<8x10xf32, #tpu.memory_space<vmem>>) attributes {dimension_semantics = [#tpu.dimension_semantics<parallel>], iteration_bounds = array<i64: 1>, scalar_prefetch = 0 : i64, scratch_operands = 0 : i64, tpu.core_type = #tpu.core_type<tc>, window_params = [{transform_indices = @transform_0, window_bounds = array<i64: 8, 784>}, {pipeline_mode = #tpu.pipeline_mode<synchronous>, transform_indices = @transform_1, window_bounds = array<i64: 784, 10>}, {pipeline_mode = #tpu.pipeline_mode<synchronous>, transform_indices = @transform_2, window_bounds = array<i64: 1, 10>}, {transform_indices = @transform_3, window_bounds = array<i64: 8, 10>}]} {
    %c0 = arith.constant 0 : index
    %c0_0 = arith.constant 0 : index
    %0 = vector.load %arg1[%c0, %c0_0] : memref<8x784xf32, #tpu.memory_space<vmem>>, vector<8x784xf32>
    %c0_1 = arith.constant 0 : index
    %c0_2 = arith.constant 0 : index
    %1 = vector.load %arg2[%c0_1, %c0_2] : memref<784x10xf32, #tpu.memory_space<vmem>>, vector<784x10xf32>
    %c0_3 = arith.constant 0 : index
    %c0_4 = arith.constant 0 : index
    %2 = vector.load %arg3[%c0_3, %c0_4] : memref<1x10xf32, #tpu.memory_space<vmem>>, vector<1x10xf32>
    %cst = arith.constant dense<0.000000e+00> : vector<8x10xf32>
    %3 = tpu.matmul %0, %1, %cst {dimension_numbers = #tpu.dot_dimension_numbers<[1], [0], [0], [1], [0, 0, 1, 1], [], []>} : vector<8x784xf32>, vector<784x10xf32>, vector<8x10xf32> -> vector<8x10xf32>
    %4 = vector.broadcast %2 : vector<1x10xf32> to vector<8x10xf32>
    %5 = arith.addf %3, %4 : vector<8x10xf32>
    %cst_5 = arith.constant dense<0xFF800000> : vector<8xf32>
    %6 = vector.multi_reduction <maximumf>, %5, %cst_5 [1] : vector<8x10xf32> to vector<8xf32>
    %7 = vector.shape_cast %6 : vector<8xf32> to vector<8x1xf32>
    %8 = vector.broadcast %7 : vector<8x1xf32> to vector<8x10xf32>
    %9 = arith.subf %5, %8 : vector<8x10xf32>
    %10 = math.exp %9 : vector<8x10xf32>
    %cst_6 = arith.constant dense<0.000000e+00> : vector<8xf32>
    %11 = vector.multi_reduction <add>, %10, %cst_6 [1] : vector<8x10xf32> to vector<8xf32>
    %12 = vector.shape_cast %11 : vector<8xf32> to vector<8x1xf32>
    %13 = vector.broadcast %12 : vector<8x1xf32> to vector<8x10xf32>
    %14 = arith.divf %10, %13 : vector<8x10xf32>
    %c0_7 = arith.constant 0 : index
    %c0_8 = arith.constant 0 : index
    %15 = vector.load %arg4[%c0_7, %c0_8] : memref<8x10xf32, #tpu.memory_space<vmem>>, vector<8x10xf32>
    tpu.vector_store %arg4[%c0_7, %c0_8], %14 {strides = array<i32>} : memref<8x10xf32, #tpu.memory_space<vmem>>, vector<8x10xf32>,
    return
  }
  func.func @transform_0(%arg0: i32) -> (i32, i32) {
    %c0_i32 = arith.constant 0 : i32
    %c0_i32_0 = arith.constant 0 : i32
    return %arg0, %c0_i32 : i32, i32
  }
  func.func @transform_1(%arg0: i32) -> (i32, i32) {
    %c0_i32 = arith.constant 0 : i32
    %c0_i32_0 = arith.constant 0 : i32
    %c0_i32_1 = arith.constant 0 : i32
    return %c0_i32, %c0_i32_0 : i32, i32
  }
  func.func @transform_2(%arg0: i32) -> (i32, i32) {
    %c0_i32 = arith.constant 0 : i32
    %c0_i32_0 = arith.constant 0 : i32
    %c0_i32_1 = arith.constant 0 : i32
    return %c0_i32, %c0_i32_0 : i32, i32
  }
  func.func @transform_3(%arg0: i32) -> (i32, i32) {
    %c0_i32 = arith.constant 0 : i32
    %c0_i32_0 = arith.constant 0 : i32
    return %arg0, %c0_i32 : i32, i32
  }
}

</mosaic_0001>

<bundles_post_ra>
// kernel: tpu_custom_call.1
= control target key start
LH: loop header
LB: loop body
LE: loop exit
PB: predicated region body
PF: predicated region fallthrough
CT: control target
= control target key end

     0   :  { %8 = vsyncpa [#allocation3], 0  ;;  %vm722_vm0 = vmmov 0   ;;  %vm149_vm1 = vcmask 130048   ;;  %vm432_vm2 = vcmask 80896   ;;  %s1077_s0 = inlined_call_operand.vmem [shape: f32[4,784], index: 0, kind: input, shape index: {}]   ;;  %s1078_s1 = inlined_call_operand.vmem [shape: f32[784,10], index: 1, kind: input, shape index: {}]   ;;  %s1079_s2 = inlined_call_operand.vmem [shape: f32[1,10], index: 2, kind: input, shape index: {}]   ;;  %s1080_s3 = inlined_call_operand.hbm [shape: f32[4,10], index: 3, kind: output, shape index: {}]  }
   0x1   :  { %v39_v0 = vld [vmem:[%s1078_s1 + $0x80] sm:$0xff]  ;;  %v40_v1 = vld [vmem:[%s1078_s1 + $0x88] sm:$0xff]  ;;  %v41_v12 = vld [vmem:[%s1078_s1 + $0x90] sm:$0xff] }
   0x2   :  { %v578_v2 = vpack.c.bf16 %v40_v1, %v39_v0  ;;  %v23_v3 = vld [vmem:[%s1078_s1] sm:$0xff]  ;;  %v24_v4 = vld [vmem:[%s1078_s1 + $0x8] sm:$0xff]  ;;  %v42_v13 = vld [vmem:[%s1078_s1 + $0x98] sm:$0xff] }
   0x3   :  { %v71_v5 = vld [vmem:[%s1078_s1 + $0x180] sm:$0xff]  ;;  %v580_v6 = vpack.c.bf16 %v24_v4, %v23_v3  ;;  %v72_v7 = vld [vmem:[%s1078_s1 + $0x188] sm:$0xff]  ;;  %v25_v14 = vld [vmem:[%s1078_s1 + $0x10] sm:$0xff]  ;;  %v582_v15 = vpack.c.bf16 %v42_v13, %v41_v12 }
   0x4   :  { %v55_v8 = vld [vmem:[%s1078_s1 + $0x100] sm:$0xff]  ;;  %v56_v9 = vld [vmem:[%s1078_s1 + $0x108] sm:$0xff]  ;;  %579 = vmatprep.subr.bf16.mxu0 %v578_v2  ;;  %v610_v10 = vpack.c.bf16 %v72_v7, %v71_v5  ;;  %v26_v16 = vld [vmem:[%s1078_s1 + $0x18] sm:$0xff] }
   0x5   :  { %v612_v11 = vpack.c.bf16 %v56_v9, %v55_v8  ;;  %581 = vmatpush3.bf16.msra.mxu0 %v580_v6  ;;  %v73_v17 = vld [vmem:[%s1078_s1 + $0x190] sm:$0xff]  ;;  %v74_v18 = vld [vmem:[%s1078_s1 + $0x198] sm:$0xff]  ;;  %v584_v19 = vpack.c.bf16 %v26_v16, %v25_v14  ;;  %v43_v23 = vld [vmem:[%s1078_s1 + $0xa0] sm:$0xff] }
   0x6   :  { %611 = vmatprep.subr.bf16.mxu1 %v610_v10  ;;  %v614_v20 = vpack.c.bf16 %v74_v18, %v73_v17  ;;  %v57_v21 = vld [vmem:[%s1078_s1 + $0x110] sm:$0xff]  ;;  %v58_v22 = vld [vmem:[%s1078_s1 + $0x118] sm:$0xff]  ;;  %583 = vmatprep.subr.bf16.mxu0 %v582_v15  ;;  %v44_v25 = vld [vmem:[%s1078_s1 + $0xa8] sm:$0xff] }
   0x7   :  { %613 = vmatpush3.bf16.msra.mxu1 %v612_v11  ;;  %v616_v24 = vpack.c.bf16 %v58_v22, %v57_v21  ;;  %v27_v26 = vld [vmem:[%s1078_s1 + $0x20] sm:$0xff]  ;;  %v28_v27 = vld [vmem:[%s1078_s1 + $0x28] sm:$0xff]  ;;  %v586_v28 = vpack.c.bf16 %v44_v25, %v43_v23  ;;  %v45_v35 = vld [vmem:[%s1078_s1 + $0xb0] sm:$0xff] }
   0x8   :  { %615 = vmatprep.subr.bf16.mxu1 %v614_v20  ;;  %v75_v29 = vld [vmem:[%s1078_s1 + $0x1a0] sm:$0xff]  ;;  %v76_v30 = vld [vmem:[%s1078_s1 + $0x1a8] sm:$0xff]  ;;  %v588_v32 = vpack.c.bf16 %v28_v27, %v27_v26  ;;  %v46_v36 = vld [vmem:[%s1078_s1 + $0xb8] sm:$0xff] }
   0x9   :  { %v59_v31 = vld [vmem:[%s1078_s1 + $0x120] sm:$0xff]  ;;  %585 = vmatpush3.bf16.msra.mxu0 %v584_v19  ;;  %v618_v33 = vpack.c.bf16 %v76_v30, %v75_v29  ;;  %v60_v34 = vld [vmem:[%s1078_s1 + $0x128] sm:$0xff]  ;;  %v590_v37 = vpack.c.bf16 %v46_v36, %v45_v35  ;;  %v29_v38 = vld [vmem:[%s1078_s1 + $0x30] sm:$0xff] }
   0xa   :  { %587 = vmatprep.subr.bf16.mxu0 %v586_v28  ;;  %v30_v39 = vld [vmem:[%s1078_s1 + $0x38] sm:$0xff]  ;;  %v77_v40 = vld [vmem:[%s1078_s1 + $0x1b0] sm:$0xff]  ;;  %v620_v41 = vpack.c.bf16 %v60_v34, %v59_v31  ;;  %v47_v46 = vld [vmem:[%s1078_s1 + $0xc0] sm:$0xff] }
   0xb   :  { %617 = vmatpush3.bf16.msra.mxu1 %v616_v24  ;;  %v78_v42 = vld [vmem:[%s1078_s1 + $0x1b8] sm:$0xff]  ;;  %v61_v43 = vld [vmem:[%s1078_s1 + $0x130] sm:$0xff]  ;;  %v48_v47 = vld [vmem:[%s1078_s1 + $0xc8] sm:$0xff]  ;;  %v592_v48 = vpack.c.bf16 %v30_v39, %v29_v38 }
   0xc   :  { %619 = vmatprep.subr.bf16.mxu1 %v618_v33  ;;  %v622_v44 = vpack.c.bf16 %v78_v42, %v77_v40  ;;  %v62_v45 = vld [vmem:[%s1078_s1 + $0x138] sm:$0xff]  ;;  %v79_v49 = vld [vmem:[%s1078_s1 + $0x1c0] sm:$0xff]  ;;  %v80_v50 = vld [vmem:[%s1078_s1 + $0x1c8] sm:$0xff]  ;;  %v594_v51 = vpack.c.bf16 %v48_v47, %v47_v46 }
   0xd   :  { %589 = vmatpush3.bf16.msra.mxu0 %v588_v32  ;;  %v31_v52 = vld [vmem:[%s1078_s1 + $0x40] sm:$0xff]  ;;  %v32_v53 = vld [vmem:[%s1078_s1 + $0x48] sm:$0xff]  ;;  %v624_v54 = vpack.c.bf16 %v62_v45, %v61_v43  ;;  %v49_v55 = vld [vmem:[%s1078_s1 + $0xd0] sm:$0xff]  ;;  %v626_v57 = vpack.c.bf16 %v80_v50, %v79_v49  ;;  %v721_v50 = vmov 0.0|0.0  }
   0xe   :  { %591 = vmatprep.subr.bf16.mxu0 %v590_v37  ;;  %v50_v56 = vld [vmem:[%s1078_s1 + $0xd8] sm:$0xff]  ;;  %v63_v58 = vld [vmem:[%s1078_s1 + $0x140] sm:$0xff]  ;;  %v64_v59 = vld [vmem:[%s1078_s1 + $0x148] sm:$0xff]  ;;  %v596_v60 = vpack.c.bf16 %v32_v53, %v31_v52 }
   0xf   :  { %621 = vmatpush3.bf16.msra.mxu1 %v620_v41  ;;  %v81_v61 = vld [vmem:[%s1078_s1 + $0x1d0] sm:$0xff]  ;;  %v82_v62 = vld [vmem:[%s1078_s1 + $0x1d8] sm:$0xff]  ;;  %v598_v63 = vpack.c.bf16 %v50_v56, %v49_v55  ;;  %v628_v2 = vpack.c.bf16 %v64_v59, %v63_v58  ;;  %v51_v3 = vld [vmem:[%s1078_s1 + $0xe0] sm:$0xff] }
  0x10   :  { %623 = vmatprep.subr.bf16.mxu1 %v622_v44  ;;  %v33_v0 = vld [vmem:[%s1078_s1 + $0x50] sm:$0xff]  ;;  %v34_v1 = vld [vmem:[%s1078_s1 + $0x58] sm:$0xff]  ;;  %v52_v4 = vld [vmem:[%s1078_s1 + $0xe8] sm:$0xff]  ;;  %v630_v5 = vpack.c.bf16 %v82_v62, %v81_v61 }
  0x11   :  { %593 = vmatpush3.bf16.msra.mxu0 %v592_v48  ;;  %v65_v6 = vld [vmem:[%s1078_s1 + $0x150] sm:$0xff]  ;;  %v66_v7 = vld [vmem:[%s1078_s1 + $0x158] sm:$0xff]  ;;  %v35_v8 = vld [vmem:[%s1078_s1 + $0x60] sm:$0xff]  ;;  %v600_v9 = vpack.c.bf16 %v34_v1, %v33_v0  ;;  %v602_v13 = vpack.c.bf16 %v52_v4, %v51_v3 }
  0x12   :  { %595 = vmatprep.subr.bf16.mxu0 %v594_v51  ;;  %v36_v10 = vld [vmem:[%s1078_s1 + $0x68] sm:$0xff]  ;;  %v83_v11 = vld [vmem:[%s1078_s1 + $0x1e0] sm:$0xff]  ;;  %v632_v15 = vpack.c.bf16 %v66_v7, %v65_v6  ;;  %v53_v16 = vld [vmem:[%s1078_s1 + $0xf0] sm:$0xff] }
  0x13   :  { %625 = vmatpush3.bf16.msra.mxu1 %v624_v54  ;;  %v84_v12 = vld [vmem:[%s1078_s1 + $0x1e8] sm:$0xff]  ;;  %v67_v14 = vld [vmem:[%s1078_s1 + $0x160] sm:$0xff]  ;;  %v54_v17 = vld [vmem:[%s1078_s1 + $0xf8] sm:$0xff]  ;;  %v604_v22 = vpack.c.bf16 %v36_v10, %v35_v8 }
  0x14   :  { %627 = vmatprep.subr.bf16.mxu1 %v626_v57  ;;  %v685_v18 = vld [vmem:[%s1077_s0 + $0x4] ss:$28 sps:$4 sm:$0xff]   ;;  %v634_v19 = vpack.c.bf16 %v84_v12, %v83_v11  ;;  %v68_v20 = vld [vmem:[%s1078_s1 + $0x168] sm:$0xff]  ;;  %v85_v21 = vld [vmem:[%s1078_s1 + $0x1f0] sm:$0xff]  ;;  %v606_v25 = vpack.c.bf16 %v54_v17, %v53_v16 }
  0x15   :  { %597 = vmatpush3.bf16.msra.mxu0 %v596_v60  ;;  %v86_v23 = vld [vmem:[%s1078_s1 + $0x1f8] sm:$0xff]  ;;  %216 = vmatprep.mubr.f32.mxu0 %v685_v18  ;;  %v688_v24 = vld [vmem:[%s1077_s0 + $0xc] ss:$28 sps:$4 sm:$0xff]   ;;  %v37_v26 = vld [vmem:[%s1078_s1 + $0x70] sm:$0xff]  ;;  %v636_v28 = vpack.c.bf16 %v68_v20, %v67_v14  ;;  %v723_v60 = vmov 0.0  }
  0x16   :  { %599 = vmatprep.subr.bf16.mxu0 %v598_v63  ;;  %v38_v27 = vld [vmem:[%s1078_s1 + $0x78] sm:$0xff]  ;;  %v103_v29 = vld [vmem:[%s1078_s1 + $0x280] sm:$0xff]  ;;  %v104_v30 = vld [vmem:[%s1078_s1 + $0x288] sm:$0xff]  ;;  %286 = vmatprep.mubr.f32.mxu1 %v688_v24  ;;  %v638_v31 = vpack.c.bf16 %v86_v23, %v85_v21 }
  0x17   :  { %629 = vmatpush3.bf16.msra.mxu1 %v628_v2  ;;  %v69_v32 = vld [vmem:[%s1078_s1 + $0x170] sm:$0xff]  ;;  %v70_v33 = vld [vmem:[%s1078_s1 + $0x178] sm:$0xff]  ;;  %v608_v34 = vpack.c.bf16 %v38_v27, %v37_v26  ;;  %v642_v35 = vpack.c.bf16 %v104_v30, %v103_v29  ;;  %v87_v36 = vld [vmem:[%s1078_s1 + $0x200] sm:$0xff] }
  0x18   :  { %631 = vmatprep.subr.bf16.mxu1 %v630_v5  ;;  %v88_v37 = vld [vmem:[%s1078_s1 + $0x208] sm:$0xff]  ;;  %v640_v38 = vpack.c.bf16 %v70_v33, %v69_v32  ;;  %v105_v39 = vld [vmem:[%s1078_s1 + $0x290] sm:$0xff]  ;;  %v106_v40 = vld [vmem:[%s1078_s1 + $0x298] sm:$0xff] }
  0x19   :  { %601 = vmatpush3.bf16.msra.mxu0 %v600_v9  ;;  %v683_v41 = vld [vmem:[%s1077_s0] ss:$28 sps:$4 sm:$0xff]   ;;  %v644_v42 = vpack.c.bf16 %v88_v37, %v87_v36  ;;  %v686_v43 = vld [vmem:[%s1077_s0 + $0x8] ss:$28 sps:$4 sm:$0xff]   ;;  %v646_v44 = vpack.c.bf16 %v106_v40, %v105_v39  ;;  %v89_v45 = vld [vmem:[%s1078_s1 + $0x210] sm:$0xff] }
  0x1a   :  { %603 = vmatprep.subr.bf16.mxu0 %v602_v13  ;;  %v90_v46 = vld [vmem:[%s1078_s1 + $0x218] sm:$0xff]  ;;  %v107_v47 = vld [vmem:[%s1078_s1 + $0x2a0] sm:$0xff]  ;;  %v108_v48 = vld [vmem:[%s1078_s1 + $0x2a8] sm:$0xff] }
  0x1b   :  { %633 = vmatpush3.bf16.msra.mxu1 %v632_v15  ;;  %v91_v49 = vld [vmem:[%s1078_s1 + $0x220] sm:$0xff]  ;;  %v648_v51 = vpack.c.bf16 %v90_v46, %v89_v45  ;;  %v691_v52 = vld [vmem:[%s1077_s0 + $0x14] ss:$28 sps:$4 sm:$0xff]   ;;  %v120_v54 = vld [vmem:[%s1078_s1 + $0x308] sm:$0xff]  ;;  %v650_v55 = vpack.c.bf16 %v108_v48, %v107_v47 }
  0x1c   :  { %635 = vmatprep.subr.bf16.mxu1 %v634_v19  ;;  %v119_v53 = vld [vmem:[%s1078_s1 + $0x300] sm:$0xff]  ;;  %v92_v56 = vld [vmem:[%s1078_s1 + $0x228] sm:$0xff]  ;;  %v109_v58 = vld [vmem:[%s1078_s1 + $0x2b0] sm:$0xff] }
  0x1d   :  { %605 = vmatpush3.bf16.msra.mxu0 %v604_v22  ;;  %v675_v57 = vpack.c.bf16 %v120_v54, %v119_v53  ;;  %v110_v59 = vld [vmem:[%s1078_s1 + $0x2b8] sm:$0xff]  ;;  %v652_v62 = vpack.c.bf16 %v92_v56, %v91_v49  ;;  %v93_v0 = vld [vmem:[%s1078_s1 + $0x230] sm:$0xff]  ;;  %v111_v2 = vld [vmem:[%s1078_s1 + $0x2c0] sm:$0xff] }
  0x1e   :  { %607 = vmatprep.subr.bf16.mxu0 %v606_v25  ;;  %v692_v61 = vld [vmem:[%s1077_s0 + $0x18] ss:$28 sps:$4 sm:$0xff]   ;;  %v654_v63 = vpack.c.bf16 %v110_v59, %v109_v58  ;;  %v112_v3 = vld [vmem:[%s1078_s1 + $0x2c8] sm:$0xff]  ;;  %v95_v6 = vld [vmem:[%s1078_s1 + $0x240] sm:$0xff] }
  0x1f   :  { %637 = vmatpush3.bf16.msra.mxu1 %v636_v28  ;;  %v94_v1 = vld [vmem:[%s1078_s1 + $0x238] sm:$0xff]  ;;  %v658_v5 = vpack.c.bf16 %v112_v3, %v111_v2  ;;  %v96_v7 = vld [vmem:[%s1078_s1 + $0x248] sm:$0xff]  ;;  %v113_v8 = vld [vmem:[%s1078_s1 + $0x2d0] sm:$0xff] }
  0x20   :  { %639 = vmatprep.subr.bf16.mxu1 %v638_v31  ;;  %v656_v4 = vpack.c.bf16 %v94_v1, %v93_v0  ;;  %v114_v9 = vld [vmem:[%s1078_s1 + $0x2d8] sm:$0xff]  ;;  %v660_v10 = vpack.c.bf16 %v96_v7, %v95_v6  ;;  %v97_v12 = vld [vmem:[%s1078_s1 + $0x250] sm:$0xff]  ;;  %v115_v14 = vld [vmem:[%s1078_s1 + $0x2e0] sm:$0xff] }
  0x21   :  { %609 = vmatpush3.bf16.msra.mxu0 %v608_v34  ;;  %v662_v11 = vpack.c.bf16 %v114_v9, %v113_v8  ;;  %v98_v13 = vld [vmem:[%s1078_s1 + $0x258] sm:$0xff]  ;;  %v116_v15 = vld [vmem:[%s1078_s1 + $0x2e8] sm:$0xff]  ;;  %v99_v18 = vld [vmem:[%s1078_s1 + $0x260] sm:$0xff] }
  0x22   :  { %643 = vmatprep.subr.bf16.mxu0 %v642_v35  ;;  %v664_v16 = vpack.c.bf16 %v98_v13, %v97_v12  ;;  %v666_v17 = vpack.c.bf16 %v116_v15, %v115_v14  ;;  %v100_v19 = vld [vmem:[%s1078_s1 + $0x268] sm:$0xff]  ;;  %v117_v20 = vld [vmem:[%s1078_s1 + $0x2f0] sm:$0xff]  ;;  %v118_v21 = vld [vmem:[%s1078_s1 + $0x2f8] sm:$0xff] }
  0x23   :  { %641 = vmatpush3.bf16.msra.mxu1 %v640_v38  ;;  %v668_v22 = vpack.c.bf16 %v100_v19, %v99_v18  ;;  %v670_v23 = vpack.c.bf16 %v118_v21, %v117_v20  ;;  %v101_v24 = vld [vmem:[%s1078_s1 + $0x270] sm:$0xff]  ;;  %v102_v25 = vld [vmem:[%s1078_s1 + $0x278] sm:$0xff]  ;;  %v461_v29 = vld [vmem:[%s1079_s2] ss:$0 sm:$0xff] }
  0x24   :  { %217 = vmatmul.mubr.f32.vlgmr.msra.gmra.mrb[0].mxu0 %v683_v41  ;;  %674 = vmatprep.subr.bf16.mxu1 %v721_v50  ;;  %v672_v26 = vpack.c.bf16 %v102_v25, %v101_v24  ;;  %v689_v27 = vld [vmem:[%s1077_s0 + $0x10] ss:$28 sps:$4 sm:$0xff]  }
  0x25   :  { %645 = vmatpush3.bf16.msra.mxu0 %v644_v42  ;;  %356 = vmatprep.mubr.f32.mxu0 %v691_v52 }
  0x26   :  { %287 = vmatmul.mubr.f32.vlgmr.msra.gmra.mrb[0].mxu1 %v686_v43  ;;  %647 = vmatprep.subr.bf16.mxu0 %v646_v44 }
  0x27   :  { %575 = vmatprep.mubr.msk.f32.mxu1 %vm722_vm0, %v723_v60  ;;  %676 = vmatpush3.bf16.msra.mxu1 %v675_v57 }
  0x29   :  { %649 = vmatpush3.bf16.msra.mxu0 %v648_v51 }
  0x2a   :  { %651 = vmatprep.subr.bf16.mxu0 %v650_v55  ;;  %576 = vmatmul.mubr.msk.f32.vlgmr.msra.gmra.mrb[2].mxu1 %vm149_vm1, %v692_v61 }
  0x2d   :  { %653 = vmatpush3.bf16.msra.mxu0 %v652_v62 }
  0x2e   :  { %655 = vmatprep.subr.bf16.mxu0 %v654_v63 }
  0x31   :  { %657 = vmatpush3.bf16.msra.mxu0 %v656_v4 }
  0x32   :  { %659 = vmatprep.subr.bf16.mxu0 %v658_v5 }
  0x35   :  { %661 = vmatpush3.bf16.msra.mxu0 %v660_v10 }
  0x36   :  { %663 = vmatprep.subr.bf16.mxu0 %v662_v11 }
  0x39   :  { %665 = vmatpush3.bf16.msra.mxu0 %v664_v16 }
  0x3a   :  { %667 = vmatprep.subr.bf16.mxu0 %v666_v17 }
  0x3d   :  { %669 = vmatpush3.bf16.msra.mxu0 %v668_v22 }
  0x3e   :  { %671 = vmatprep.subr.bf16.mxu0 %v670_v23 }
  0x41   :  { %673 = vmatpush3.bf16.msra.mxu0 %v672_v26 }
  0x44   :  { %357 = vmatmul.mubr.f32.vlgmr.msra.gmra.mrb[2].mxu0 %v689_v27 }
  0xf7   :  { %v495_v28 = vpop.f32.mrb[0].mxu0 }
  0xf8   :  { %v496_v30 = vpop.f32.mrb[1].mxu0 }
  0xf9   :  { %v497_v31 = vadd.f32 %v496_v30, %v495_v28  ;;  %v530_v32 = vpop.f32.mrb[0].mxu1 }
  0xfa   :  { %v531_v33 = vpop.f32.mrb[1].mxu1 }
  0xfb   :  { %v219_v34 = vadd.f32 %v497_v31, %v461_v29  ;;  %v532_v35 = vadd.f32 %v531_v33, %v530_v32 }
  0xfd   :  { %v289_v36 = vadd.f32 %v532_v35, %v219_v34  ;;  %v428_v37 = vpop.f32.mrb[2].mxu1 }
  0xfe   :  { %v577_v38 = vpop.f32.mrb[3].mxu1 }
 0x117   :  { %v565_v39 = vpop.f32.mrb[2].mxu0 }
 0x118   :  { %v566_v40 = vpop.f32.mrb[3].mxu0 }
 0x119   :  { %v567_v41 = vadd.f32 %v566_v40, %v565_v39 }
 0x11b   :  { %v359_v42 = vadd.f32 %v567_v41, %v289_v36 }
 0x11d   :  { %v429_v43 = vadd.f32 %v428_v37, %v359_v42 }
 0x11f   :  { %v433_v44 = vsel %vm432_vm2, %v429_v43, -inf }
 0x120   :  { %434 = vmax.xlane.f32.xlu0 %v433_v44 }
 0x1ad   :  { %v435_v45 = vpop.xlane.xlu0 %434 }
 0x1ae   :  { %v436_v46 = vsub.f32 %v429_v43, %v435_v45 }
 0x1b0   :  { %v437_v47 = vmul.f32 1.442695, %v436_v46 }
 0x1b2   :  { %693 = vpow2.f32 %v437_v47 }
 0x1bc   :  { %v694_v48 = vpop.eup %693 }
 0x1bd   :  { %v439_v49 = vsel %vm432_vm2, %v694_v48, 0.0 }
 0x1be   :  { %440 = vadd.xlane.f32.xlu0 %v439_v49 }
 0x24b   :  { %v441_v50 = vpop.xlane.xlu0 %440 }
 0x24c   :  { %695 = vrcp.f32 %v441_v50 }
 0x256   :  { %v696_v51 = vpop.eup %695 }
 0x257   :  { %v443_v52 = vmul.f32 %v696_v51, %v694_v48 }
 0x259   :  { %444 = vst.msk [vmem:[#allocation2] sm:$0xff] %vm432_vm2, %v443_v52 }
 0x25a   :  { %449 = vsyncadd [#allocation3], 64  ;;  %s724_s0 = smov [#allocation2]  }
 0x25b   :  { %s450_s1 = sshll.u32 %s724_s0, 4  ;;  %s451_s1 = int_to_ptr.vmem [resolvable:$true] %s450_s1 }
 0x25c   :  { %s697_s2 = scalar_lea.vmem %s451_s1, 64  ;;  %s701_s8 = scalar_lea.vmem %s451_s1, 128 }
 0x25d   :  { %p698_p0 = scmp.ne.s32.totalorder %s451_s1, %s697_s2  ;;  %p702_p1 = scmp.lt.s32.totalorder %s451_s1, %s451_s1 }
 0x25e   :  { %p703_p2 = scmp.lt.s32.totalorder %s701_s8, %s697_s2 }
 0x260   :  { %p704_p3 = por %p703_p2, %p702_p1 }
 0x262   :  { %p705_p4 = pnand %p704_p3, %p698_p0 }
 0x264   :  { %708 = shalt.err (!%p705_p4)
}
 0x265   :  { %s709_s11 = scalar_lea.hbm %s1080_s3, 64 }
 0x266   :  { %p710_p5 = scmp.ne.s32.totalorder %s1080_s3, %s709_s11  ;;  %p713_p6 = scmp.lt.u32.totalorder %s709_s11, %s1080_s3 }
 0x268   :  { %p715_p7 = pnand %p713_p6, %p710_p5 }
 0x26a   :  { %718 = shalt.err (!%p715_p7)
}
 0x26b   :  { %s725_s16 = smov 64   ;;  %s726_s17 = smov 4  }
 0x26c   :  { %456 = dma.vmem_to_hbm [thread:$0]  %s451_s1, 64, %s1080_s3, [#allocation3], %s725_s16, %s725_s16, %s726_s17  }
 0x26d   :  { %719 = dma.done.wait [#allocation3], 128  }
 0x26e   :  { %720 = vsyncadd [#allocation3], 4294967168 }
 0x26f   :  { %460 = vsyncpa [#allocation3], 1 }

</bundles_post_ra>
